<compile_context>
chip_gen: v7x
topology: tpu7x:2x2x1
jax: 0.10.0
libtpu: 0.0.40
codegen_flags: <defaults>
</compile_context>

<pallas_src>
import functools

import jax
import jax.numpy as jnp
from jax.experimental import pallas as pl
from jax.experimental.pallas import tpu as pltpu

EPS = 1e-5  # nn.LayerNorm default


def _layer_norm(x, g, b):
    mean = jnp.mean(x, axis=-1, keepdims=True)
    var = jnp.mean(jnp.square(x - mean), axis=-1, keepdims=True)
    return (x - mean) * jax.lax.rsqrt(var + EPS) * g + b


def _transformer_layer_kernel(
    x_ref,
    ln1_g_ref, ln1_b_ref,
    wqkv_ref, bqkv_ref,
    wout_ref, bout_ref,
    ln2_g_ref, ln2_b_ref,
    w1_ref, b1_ref,
    w2_ref, b2_ref,
    o_ref,
    *, n_heads: int, approx_recip: bool,
):
    Bt, N, D = x_ref.shape
    hd = D // n_heads
    mm_dtype = wqkv_ref.dtype          # dtype fed to the MXU (bf16 or f32)

    # Flatten (Bt, N) -> rows so every dense matmul sees Bt*N MXU rows.
    x = x_ref[...].reshape(Bt * N, D).astype(jnp.float32)

    # ---------------- LayerNorm before attention (f32 stats) ----------------
    xn = _layer_norm(x, ln1_g_ref[...], ln1_b_ref[...])

    # ---------------- fused QKV projection (one row-dense matmul) -----------
    qkv = jnp.dot(xn.astype(mm_dtype), wqkv_ref[...],
                  preferred_element_type=jnp.float32) + bqkv_ref[...]  # (Bt*N, 3D) f32

    # ---------------- Multi-head attention ----------------
    # Static loop over heads; each head handles all Bt batch elements of the
    # tile with batched contractions.  Head outputs are accumulated directly
    # into the output projection (no concatenate, no materialized transpose).
    attn = jnp.zeros((Bt * N, D), jnp.float32)
    for h in range(n_heads):
        lo = h * hd
        q = qkv[:, lo:lo + hd].reshape(Bt, N, hd)
        k = qkv[:, D + lo:D + lo + hd].reshape(Bt, N, hd)
        v = qkv[:, 2 * D + lo:2 * D + lo + hd].reshape(Bt, N, hd)

        # NOTE: scores intentionally UNscaled (reference never uses self.scaling).
        s = jnp.einsum('bqd,bkd->bqk', q.astype(mm_dtype), k.astype(mm_dtype),
                       preferred_element_type=jnp.float32)          # (Bt, N, N)
        s = s - jnp.max(s, axis=-1, keepdims=True)
        p = jnp.exp(s)
        denom = jnp.sum(p, axis=-1, keepdims=True)
        p = p * pl.reciprocal(denom, approx=approx_recip)           # EUP, not VALU divide
        # attn_dropout is identity in eval mode

        o_h = jnp.einsum('bqk,bkd->bqd', p.astype(mm_dtype), v.astype(mm_dtype),
                         preferred_element_type=jnp.float32)        # (Bt, N, hd)
        attn += jnp.dot(o_h.reshape(Bt * N, hd).astype(mm_dtype),
                        wout_ref[lo:lo + hd, :],
                        preferred_element_type=jnp.float32)
    attn = attn + bout_ref[...]

    # dropout after attention is identity in eval mode
    x1 = attn + x                                                   # residual 1

    # ---------------- LayerNorm before FFN ----------------
    xn2 = _layer_norm(x1, ln2_g_ref[...], ln2_b_ref[...])

    # ---------------- FFN ----------------
    h1 = jnp.dot(xn2.astype(mm_dtype), w1_ref[...],
                 preferred_element_type=jnp.float32) + b1_ref[...]
    h1 = jnp.maximum(h1, 0.0)                                       # ReLU (ffn dropout = identity)
    ffn = jnp.dot(h1.astype(mm_dtype), w2_ref[...],
                  preferred_element_type=jnp.float32) + b2_ref[...]

    o_ref[...] = (ffn + x1).reshape(Bt, N, D).astype(o_ref.dtype)   # residual 2


def _choose_batch_tile(B, N):
    """Aim for >=128 MXU rows per grid step, but keep >=2 parallel grid steps
    when possible so both TensorCores of a v7x chip get work."""
    bt = max(1, min(B, max(1, 128 // N)))
    while B % bt:
        bt -= 1
    if B // bt < 2 and bt % 2 == 0:
        bt //= 2
    return bt


def transformer_layer(x, params, *, n_heads: int, mm_dtype=jnp.bfloat16,
                      batch_tile=None):
    """x: (B, N, D) float32.  params: dict of weights (see init_params).

    mm_dtype: dtype presented to the MXU (bf16 recommended; f32 for
    bit-accurate checks).  LayerNorm / softmax stats and all matmul
    accumulation stay in float32.
    """
    B, N, D = x.shape
    assert D % n_heads == 0, "n_heads must divide model_dim"
    bt = _choose_batch_tile(B, N) if batch_tile is None else batch_tile
    assert B % bt == 0

    f32 = jnp.float32
    mm = lambda w: w.astype(mm_dtype)
    # Weights feeding the MXU are cast once in the wrapper (halves weight VMEM
    # traffic in the bf16 path); LN params and biases stay f32.
    param_list = [
        params["ln1_g"].astype(f32), params["ln1_b"].astype(f32),
        mm(params["w_qkv"]), params["b_qkv"].astype(f32),
        mm(params["w_out"]), params["b_out"].astype(f32),
        params["ln2_g"].astype(f32), params["ln2_b"].astype(f32),
        mm(params["w1"]), params["b1"].astype(f32),
        mm(params["w2"]), params["b2"].astype(f32),
    ]

    def full_spec(shape):
        nd = len(shape)
        return pl.BlockSpec(shape, lambda b, _nd=nd: (0,) * _nd)

    in_specs = [pl.BlockSpec((bt, N, D), lambda b: (b, 0, 0))]
    in_specs += [full_spec(p.shape) for p in param_list]

    kernel = functools.partial(
        _transformer_layer_kernel,
        n_heads=n_heads,
        approx_recip=(mm_dtype != jnp.float32),
    )

    # For realistic model_dim/ffn_dim on v7x, additionally: single-buffer the
    # grid-invariant weight specs (pl.Buffered(1)) or tile the FFN over an
    # extra "arbitrary" grid axis, raise vmem_limit_bytes, and flash-tile the
    # attention over KV blocks for large N.  Unnecessary at these shapes.
    return pl.pallas_call(
        kernel,
        out_shape=jax.ShapeDtypeStruct((B, N, D), x.dtype),
        grid_spec=pltpu.PrefetchScalarGridSpec(
            num_scalar_prefetch=0,
            grid=(B // bt,),
            in_specs=in_specs,
            out_specs=pl.BlockSpec((bt, N, D), lambda b: (b, 0, 0)),
        ),
        compiler_params=pltpu.CompilerParams(
            dimension_semantics=("parallel",)),
    )(x, *param_list)


def init_params(key, model_dim, ffn_dim):
    """Deterministic synthetic parameters (weights stored as (in, out))."""
    ks = jax.random.split(key, 6)
    s = 0.05
    return {
        "ln1_g": jnp.ones((1, model_dim), jnp.float32),
        "ln1_b": jnp.zeros((1, model_dim), jnp.float32),
        "w_qkv": s * jax.random.normal(ks[0], (model_dim, 3 * model_dim), jnp.float32),
        "b_qkv": s * jax.random.normal(ks[1], (1, 3 * model_dim), jnp.float32),
        "w_out": s * jax.random.normal(ks[2], (model_dim, model_dim), jnp.float32),
        "b_out": s * jax.random.normal(ks[3], (1, model_dim), jnp.float32),
        "ln2_g": jnp.ones((1, model_dim), jnp.float32),
        "ln2_b": jnp.zeros((1, model_dim), jnp.float32),
        "w1": s * jax.random.normal(ks[4], (model_dim, ffn_dim), jnp.float32),
        "b1": jnp.zeros((1, ffn_dim), jnp.float32),
        "w2": s * jax.random.normal(ks[5], (ffn_dim, model_dim), jnp.float32),
        "b2": jnp.zeros((1, model_dim), jnp.float32),
    }


def _reference(x, p, n_heads):
    """Pure-JAX reference mirroring the PyTorch forward (eval mode)."""
    B, N, D = x.shape
    hd = D // n_heads

    def ln(v, g, b):
        m = jnp.mean(v, axis=-1, keepdims=True)
        va = jnp.mean(jnp.square(v - m), axis=-1, keepdims=True)
        return (v - m) * jax.lax.rsqrt(va + EPS) * g + b

    res = x
    xn = ln(x, p["ln1_g"], p["ln1_b"])
    qkv = xn @ p["w_qkv"] + p["b_qkv"]                       # (B, N, 3D)
    q, k, v = jnp.split(qkv, 3, axis=-1)
    q = q.reshape(B, N, n_heads, hd).transpose(0, 2, 1, 3)   # (B, H, N, hd)
    k = k.reshape(B, N, n_heads, hd).transpose(0, 2, 1, 3)
    v = v.reshape(B, N, n_heads, hd).transpose(0, 2, 1, 3)
    w = jax.nn.softmax(jnp.einsum("bhqd,bhkd->bhqk", q, k), axis=-1)  # unscaled
    o = jnp.einsum("bhqk,bhkd->bhqd", w, v).transpose(0, 2, 1, 3).reshape(B, N, D)
    o = o @ p["w_out"] + p["b_out"]
    x1 = o + res
    xn2 = ln(x1, p["ln2_g"], p["ln2_b"])
    h = jnp.maximum(xn2 @ p["w1"] + p["b1"], 0.0)
    return h @ p["w2"] + p["b2"] + x1


if __name__ == "__main__":
    B, N, D, H, F = 2, 8, 32, 4, 64   # batch, num_crops (seq), model_dim, heads, ffn_dim

    key = jax.random.PRNGKey(0)
    kx, kp = jax.random.split(key)
    x = jax.random.normal(kx, (B, N, D), jnp.float32)
    params = init_params(kp, D, F)
    ref = _reference(x, params, H)

    # Exact path: f32 MXU inputs, tight tolerance vs. the f32 reference.
    out_f32 = jax.block_until_ready(
        transformer_layer(x, params, n_heads=H, mm_dtype=jnp.float32))
    assert out_f32.shape == (B, N, D)
    assert jnp.allclose(out_f32, ref, rtol=1e-4, atol=1e-4), "f32 path mismatch"

    # Fast path: bf16 MXU inputs with f32 accumulation / f32 LN & softmax stats.
    out_bf16 = jax.block_until_ready(
        transformer_layer(x, params, n_heads=H, mm_dtype=jnp.bfloat16))
    assert out_bf16.shape == (B, N, D)
    assert jnp.allclose(out_bf16, ref, rtol=2e-2, atol=2e-2), "bf16 path mismatch"

    print("KERNEL_OK")
</pallas_src>

<mosaic_0001>
module attributes {stable_mosaic.version = 11 : i64} {
  func.func @_transformer_layer_kernel(%arg0: i32, %arg1: memref<1x8x32xf32, #tpu.memory_space<vmem>>, %arg2: memref<1x32xf32, #tpu.memory_space<vmem>>, %arg3: memref<1x32xf32, #tpu.memory_space<vmem>>, %arg4: memref<32x96xf32, #tpu.memory_space<vmem>>, %arg5: memref<1x96xf32, #tpu.memory_space<vmem>>, %arg6: memref<32x32xf32, #tpu.memory_space<vmem>>, %arg7: memref<1x32xf32, #tpu.memory_space<vmem>>, %arg8: memref<1x32xf32, #tpu.memory_space<vmem>>, %arg9: memref<1x32xf32, #tpu.memory_space<vmem>>, %arg10: memref<32x64xf32, #tpu.memory_space<vmem>>, %arg11: memref<1x64xf32, #tpu.memory_space<vmem>>, %arg12: memref<64x32xf32, #tpu.memory_space<vmem>>, %arg13: memref<1x32xf32, #tpu.memory_space<vmem>>, %arg14: memref<1x8x32xf32, #tpu.memory_space<vmem>>) attributes {dimension_semantics = [#tpu.dimension_semantics<parallel>], iteration_bounds = array<i64: 2>, scalar_prefetch = 0 : i64, scratch_operands = 0 : i64, tpu.core_type = #tpu.core_type<tc>, window_params = [{transform_indices = @transform_0, window_bounds = array<i64: 1, 8, 32>}, {pipeline_mode = #tpu.pipeline_mode<synchronous>, transform_indices = @transform_1, window_bounds = array<i64: 1, 32>}, {pipeline_mode = #tpu.pipeline_mode<synchronous>, transform_indices = @transform_2, window_bounds = array<i64: 1, 32>}, {pipeline_mode = #tpu.pipeline_mode<synchronous>, transform_indices = @transform_3, window_bounds = array<i64: 32, 96>}, {pipeline_mode = #tpu.pipeline_mode<synchronous>, transform_indices = @transform_4, window_bounds = array<i64: 1, 96>}, {pipeline_mode = #tpu.pipeline_mode<synchronous>, transform_indices = @transform_5, window_bounds = array<i64: 32, 32>}, {pipeline_mode = #tpu.pipeline_mode<synchronous>, transform_indices = @transform_6, window_bounds = array<i64: 1, 32>}, {pipeline_mode = #tpu.pipeline_mode<synchronous>, transform_indices = @transform_7, window_bounds = array<i64: 1, 32>}, {pipeline_mode = #tpu.pipeline_mode<synchronous>, transform_indices = @transform_8, window_bounds = array<i64: 1, 32>}, {pipeline_mode = #tpu.pipeline_mode<synchronous>, transform_indices = @transform_9, window_bounds = array<i64: 32, 64>}, {pipeline_mode = #tpu.pipeline_mode<synchronous>, transform_indices = @transform_10, window_bounds = array<i64: 1, 64>}, {pipeline_mode = #tpu.pipeline_mode<synchronous>, transform_indices = @transform_11, window_bounds = array<i64: 64, 32>}, {pipeline_mode = #tpu.pipeline_mode<synchronous>, transform_indices = @transform_12, window_bounds = array<i64: 1, 32>}, {transform_indices = @transform_13, window_bounds = array<i64: 1, 8, 32>}]} {
    %c0 = arith.constant 0 : index
    %c0_0 = arith.constant 0 : index
    %c0_1 = arith.constant 0 : index
    %0 = vector.load %arg1[%c0, %c0_0, %c0_1] : memref<1x8x32xf32, #tpu.memory_space<vmem>>, vector<1x8x32xf32>
    %1 = vector.shape_cast %0 : vector<1x8x32xf32> to vector<8x32xf32>
    %c0_2 = arith.constant 0 : index
    %c0_3 = arith.constant 0 : index
    %2 = vector.load %arg2[%c0_2, %c0_3] : memref<1x32xf32, #tpu.memory_space<vmem>>, vector<1x32xf32>
    %c0_4 = arith.constant 0 : index
    %c0_5 = arith.constant 0 : index
    %3 = vector.load %arg3[%c0_4, %c0_5] : memref<1x32xf32, #tpu.memory_space<vmem>>, vector<1x32xf32>
    %cst = arith.constant dense<0.000000e+00> : vector<8xf32>
    %4 = vector.multi_reduction <add>, %1, %cst [1] : vector<8x32xf32> to vector<8xf32>
    %5 = vector.shape_cast %4 : vector<8xf32> to vector<8x1xf32>
    %cst_6 = arith.constant 3.200000e+01 : f32
    %6 = vector.broadcast %cst_6 : f32 to vector<8x1xf32>
    %7 = arith.divf %5, %6 : vector<8x1xf32>
    %8 = vector.broadcast %7 : vector<8x1xf32> to vector<8x32xf32>
    %9 = arith.subf %1, %8 : vector<8x32xf32>
    %10 = arith.mulf %9, %9 : vector<8x32xf32>
    %cst_7 = arith.constant dense<0.000000e+00> : vector<8xf32>
    %11 = vector.multi_reduction <add>, %10, %cst_7 [1] : vector<8x32xf32> to vector<8xf32>
    %12 = vector.shape_cast %11 : vector<8xf32> to vector<8x1xf32>
    %cst_8 = arith.constant 3.200000e+01 : f32
    %13 = vector.broadcast %cst_8 : f32 to vector<8x1xf32>
    %14 = arith.divf %12, %13 : vector<8x1xf32>
    %15 = vector.broadcast %7 : vector<8x1xf32> to vector<8x32xf32>
    %16 = arith.subf %1, %15 : vector<8x32xf32>
    %cst_9 = arith.constant 9.99999974E-6 : f32
    %17 = vector.broadcast %cst_9 : f32 to vector<8x1xf32>
    %18 = arith.addf %14, %17 : vector<8x1xf32>
    %19 = math.rsqrt %18 : vector<8x1xf32>
    %20 = vector.broadcast %19 : vector<8x1xf32> to vector<8x32xf32>
    %21 = arith.mulf %16, %20 : vector<8x32xf32>
    %22 = vector.broadcast %2 : vector<1x32xf32> to vector<8x32xf32>
    %23 = arith.mulf %21, %22 : vector<8x32xf32>
    %24 = vector.broadcast %3 : vector<1x32xf32> to vector<8x32xf32>
    %25 = arith.addf %23, %24 : vector<8x32xf32>
    %c0_10 = arith.constant 0 : index
    %c0_11 = arith.constant 0 : index
    %26 = vector.load %arg4[%c0_10, %c0_11] : memref<32x96xf32, #tpu.memory_space<vmem>>, vector<32x96xf32>
    %cst_12 = arith.constant dense<0.000000e+00> : vector<8x96xf32>
    %27 = tpu.matmul %25, %26, %cst_12 {dimension_numbers = #tpu.dot_dimension_numbers<[1], [0], [0], [1], [0, 0, 1, 1], [], []>} : vector<8x32xf32>, vector<32x96xf32>, vector<8x96xf32> -> vector<8x96xf32>
    %c0_13 = arith.constant 0 : index
    %c0_14 = arith.constant 0 : index
    %28 = vector.load %arg5[%c0_13, %c0_14] : memref<1x96xf32, #tpu.memory_space<vmem>>, vector<1x96xf32>
    %29 = vector.broadcast %28 : vector<1x96xf32> to vector<8x96xf32>
    %30 = arith.addf %27, %29 : vector<8x96xf32>
    %cst_15 = arith.constant 0.000000e+00 : f32
    %31 = vector.broadcast %cst_15 : f32 to vector<8x32xf32>
    %32 = vector.extract_strided_slice %30 {offsets = [0, 0], sizes = [8, 8], strides = [1, 1]} : vector<8x96xf32> to vector<8x8xf32>
    %33 = vector.shape_cast %32 : vector<8x8xf32> to vector<1x8x8xf32>
    %34 = vector.extract_strided_slice %30 {offsets = [0, 32], sizes = [8, 8], strides = [1, 1]} : vector<8x96xf32> to vector<8x8xf32>
    %35 = vector.shape_cast %34 : vector<8x8xf32> to vector<1x8x8xf32>
    %36 = vector.extract_strided_slice %30 {offsets = [0, 64], sizes = [8, 8], strides = [1, 1]} : vector<8x96xf32> to vector<8x8xf32>
    %37 = vector.shape_cast %36 : vector<8x8xf32> to vector<1x8x8xf32>
    "tpu.trace_start"() <{level = 10 : i32, message = "bqd,bkd->bqk"}> : () -> ()
    %cst_16 = arith.constant dense<0.000000e+00> : vector<1x8x8xf32>
    %38 = tpu.matmul %33, %35, %cst_16 {dimension_numbers = #tpu.dot_dimension_numbers<[2], [2], [1], [1], [0, 0, 0, 1, 1, 1], [0], [0]>} : vector<1x8x8xf32>, vector<1x8x8xf32>, vector<1x8x8xf32> -> vector<1x8x8xf32>
    "tpu.trace_stop"() : () -> ()
    %cst_17 = arith.constant dense<0xFF800000> : vector<1x8xf32>
    %39 = vector.multi_reduction <maximumf>, %38, %cst_17 [2] : vector<1x8x8xf32> to vector<1x8xf32>
    %40 = vector.shape_cast %39 : vector<1x8xf32> to vector<1x8x1xf32>
    %41 = vector.broadcast %40 : vector<1x8x1xf32> to vector<1x8x8xf32>
    %42 = arith.subf %38, %41 : vector<1x8x8xf32>
    %43 = math.exp %42 : vector<1x8x8xf32>
    %cst_18 = arith.constant dense<0.000000e+00> : vector<1x8xf32>
    %44 = vector.multi_reduction <add>, %43, %cst_18 [2] : vector<1x8x8xf32> to vector<1x8xf32>
    %45 = vector.shape_cast %44 : vector<1x8xf32> to vector<1x8x1xf32>
    %46 = tpu.reciprocal %45 : vector<1x8x1xf32> -> vector<1x8x1xf32>
    %47 = vector.broadcast %46 : vector<1x8x1xf32> to vector<1x8x8xf32>
    %48 = arith.mulf %43, %47 : vector<1x8x8xf32>
    "tpu.trace_start"() <{level = 10 : i32, message = "bqk,bkd->bqd"}> : () -> ()
    %cst_19 = arith.constant dense<0.000000e+00> : vector<1x8x8xf32>
    %49 = tpu.matmul %48, %37, %cst_19 {dimension_numbers = #tpu.dot_dimension_numbers<[2], [1], [1], [2], [0, 0, 0, 1, 1, 2], [0], [0]>} : vector<1x8x8xf32>, vector<1x8x8xf32>, vector<1x8x8xf32> -> vector<1x8x8xf32>
    "tpu.trace_stop"() : () -> ()
    %50 = vector.shape_cast %49 : vector<1x8x8xf32> to vector<8x8xf32>
    %c0_20 = arith.constant 0 : index
    %c0_21 = arith.constant 0 : index
    %51 = vector.load %arg6[%c0_20, %c0_21] : memref<32x32xf32, #tpu.memory_space<vmem>>, vector<8x32xf32>
    %cst_22 = arith.constant dense<0.000000e+00> : vector<8x32xf32>
    %52 = tpu.matmul %50, %51, %cst_22 {dimension_numbers = #tpu.dot_dimension_numbers<[1], [0], [0], [1], [0, 0, 1, 1], [], []>} : vector<8x8xf32>, vector<8x32xf32>, vector<8x32xf32> -> vector<8x32xf32>
    %53 = arith.addf %31, %52 : vector<8x32xf32>
    %54 = vector.extract_strided_slice %30 {offsets = [0, 8], sizes = [8, 8], strides = [1, 1]} : vector<8x96xf32> to vector<8x8xf32>
    %55 = vector.shape_cast %54 : vector<8x8xf32> to vector<1x8x8xf32>
    %56 = vector.extract_strided_slice %30 {offsets = [0, 40], sizes = [8, 8], strides = [1, 1]} : vector<8x96xf32> to vector<8x8xf32>
    %57 = vector.shape_cast %56 : vector<8x8xf32> to vector<1x8x8xf32>
    %58 = vector.extract_strided_slice %30 {offsets = [0, 72], sizes = [8, 8], strides = [1, 1]} : vector<8x96xf32> to vector<8x8xf32>
    %59 = vector.shape_cast %58 : vector<8x8xf32> to vector<1x8x8xf32>
    "tpu.trace_start"() <{level = 10 : i32, message = "bqd,bkd->bqk"}> : () -> ()
    %cst_23 = arith.constant dense<0.000000e+00> : vector<1x8x8xf32>
    %60 = tpu.matmul %55, %57, %cst_23 {dimension_numbers = #tpu.dot_dimension_numbers<[2], [2], [1], [1], [0, 0, 0, 1, 1, 1], [0], [0]>} : vector<1x8x8xf32>, vector<1x8x8xf32>, vector<1x8x8xf32> -> vector<1x8x8xf32>
    "tpu.trace_stop"() : () -> ()
    %cst_24 = arith.constant dense<0xFF800000> : vector<1x8xf32>
    %61 = vector.multi_reduction <maximumf>, %60, %cst_24 [2] : vector<1x8x8xf32> to vector<1x8xf32>
    %62 = vector.shape_cast %61 : vector<1x8xf32> to vector<1x8x1xf32>
    %63 = vector.broadcast %62 : vector<1x8x1xf32> to vector<1x8x8xf32>
    %64 = arith.subf %60, %63 : vector<1x8x8xf32>
    %65 = math.exp %64 : vector<1x8x8xf32>
    %cst_25 = arith.constant dense<0.000000e+00> : vector<1x8xf32>
    %66 = vector.multi_reduction <add>, %65, %cst_25 [2] : vector<1x8x8xf32> to vector<1x8xf32>
    %67 = vector.shape_cast %66 : vector<1x8xf32> to vector<1x8x1xf32>
    %68 = tpu.reciprocal %67 : vector<1x8x1xf32> -> vector<1x8x1xf32>
    %69 = vector.broadcast %68 : vector<1x8x1xf32> to vector<1x8x8xf32>
    %70 = arith.mulf %65, %69 : vector<1x8x8xf32>
    "tpu.trace_start"() <{level = 10 : i32, message = "bqk,bkd->bqd"}> : () -> ()
    %cst_26 = arith.constant dense<0.000000e+00> : vector<1x8x8xf32>
    %71 = tpu.matmul %70, %59, %cst_26 {dimension_numbers = #tpu.dot_dimension_numbers<[2], [1], [1], [2], [0, 0, 0, 1, 1, 2], [0], [0]>} : vector<1x8x8xf32>, vector<1x8x8xf32>, vector<1x8x8xf32> -> vector<1x8x8xf32>
    "tpu.trace_stop"() : () -> ()
    %72 = vector.shape_cast %71 : vector<1x8x8xf32> to vector<8x8xf32>
    %c8 = arith.constant 8 : index
    %c0_27 = arith.constant 0 : index
    %73 = vector.load %arg6[%c8, %c0_27] : memref<32x32xf32, #tpu.memory_space<vmem>>, vector<8x32xf32>
    %cst_28 = arith.constant dense<0.000000e+00> : vector<8x32xf32>
    %74 = tpu.matmul %72, %73, %cst_28 {dimension_numbers = #tpu.dot_dimension_numbers<[1], [0], [0], [1], [0, 0, 1, 1], [], []>} : vector<8x8xf32>, vector<8x32xf32>, vector<8x32xf32> -> vector<8x32xf32>
    %75 = arith.addf %53, %74 : vector<8x32xf32>
    %76 = vector.extract_strided_slice %30 {offsets = [0, 16], sizes = [8, 8], strides = [1, 1]} : vector<8x96xf32> to vector<8x8xf32>
    %77 = vector.shape_cast %76 : vector<8x8xf32> to vector<1x8x8xf32>
    %78 = vector.extract_strided_slice %30 {offsets = [0, 48], sizes = [8, 8], strides = [1, 1]} : vector<8x96xf32> to vector<8x8xf32>
    %79 = vector.shape_cast %78 : vector<8x8xf32> to vector<1x8x8xf32>
    %80 = vector.extract_strided_slice %30 {offsets = [0, 80], sizes = [8, 8], strides = [1, 1]} : vector<8x96xf32> to vector<8x8xf32>
    %81 = vector.shape_cast %80 : vector<8x8xf32> to vector<1x8x8xf32>
    "tpu.trace_start"() <{level = 10 : i32, message = "bqd,bkd->bqk"}> : () -> ()
    %cst_29 = arith.constant dense<0.000000e+00> : vector<1x8x8xf32>
    %82 = tpu.matmul %77, %79, %cst_29 {dimension_numbers = #tpu.dot_dimension_numbers<[2], [2], [1], [1], [0, 0, 0, 1, 1, 1], [0], [0]>} : vector<1x8x8xf32>, vector<1x8x8xf32>, vector<1x8x8xf32> -> vector<1x8x8xf32>
    "tpu.trace_stop"() : () -> ()
    %cst_30 = arith.constant dense<0xFF800000> : vector<1x8xf32>
    %83 = vector.multi_reduction <maximumf>, %82, %cst_30 [2] : vector<1x8x8xf32> to vector<1x8xf32>
    %84 = vector.shape_cast %83 : vector<1x8xf32> to vector<1x8x1xf32>
    %85 = vector.broadcast %84 : vector<1x8x1xf32> to vector<1x8x8xf32>
    %86 = arith.subf %82, %85 : vector<1x8x8xf32>
    %87 = math.exp %86 : vector<1x8x8xf32>
    %cst_31 = arith.constant dense<0.000000e+00> : vector<1x8xf32>
    %88 = vector.multi_reduction <add>, %87, %cst_31 [2] : vector<1x8x8xf32> to vector<1x8xf32>
    %89 = vector.shape_cast %88 : vector<1x8xf32> to vector<1x8x1xf32>
    %90 = tpu.reciprocal %89 : vector<1x8x1xf32> -> vector<1x8x1xf32>
    %91 = vector.broadcast %90 : vector<1x8x1xf32> to vector<1x8x8xf32>
    %92 = arith.mulf %87, %91 : vector<1x8x8xf32>
    "tpu.trace_start"() <{level = 10 : i32, message = "bqk,bkd->bqd"}> : () -> ()
    %cst_32 = arith.constant dense<0.000000e+00> : vector<1x8x8xf32>
    %93 = tpu.matmul %92, %81, %cst_32 {dimension_numbers = #tpu.dot_dimension_numbers<[2], [1], [1], [2], [0, 0, 0, 1, 1, 2], [0], [0]>} : vector<1x8x8xf32>, vector<1x8x8xf32>, vector<1x8x8xf32> -> vector<1x8x8xf32>
    "tpu.trace_stop"() : () -> ()
    %94 = vector.shape_cast %93 : vector<1x8x8xf32> to vector<8x8xf32>
    %c16 = arith.constant 16 : index
    %c0_33 = arith.constant 0 : index
    %95 = vector.load %arg6[%c16, %c0_33] : memref<32x32xf32, #tpu.memory_space<vmem>>, vector<8x32xf32>
    %cst_34 = arith.constant dense<0.000000e+00> : vector<8x32xf32>
    %96 = tpu.matmul %94, %95, %cst_34 {dimension_numbers = #tpu.dot_dimension_numbers<[1], [0], [0], [1], [0, 0, 1, 1], [], []>} : vector<8x8xf32>, vector<8x32xf32>, vector<8x32xf32> -> vector<8x32xf32>
    %97 = arith.addf %75, %96 : vector<8x32xf32>
    %98 = vector.extract_strided_slice %30 {offsets = [0, 24], sizes = [8, 8], strides = [1, 1]} : vector<8x96xf32> to vector<8x8xf32>
    %99 = vector.shape_cast %98 : vector<8x8xf32> to vector<1x8x8xf32>
    %100 = vector.extract_strided_slice %30 {offsets = [0, 56], sizes = [8, 8], strides = [1, 1]} : vector<8x96xf32> to vector<8x8xf32>
    %101 = vector.shape_cast %100 : vector<8x8xf32> to vector<1x8x8xf32>
    %102 = vector.extract_strided_slice %30 {offsets = [0, 88], sizes = [8, 8], strides = [1, 1]} : vector<8x96xf32> to vector<8x8xf32>
    %103 = vector.shape_cast %102 : vector<8x8xf32> to vector<1x8x8xf32>
    "tpu.trace_start"() <{level = 10 : i32, message = "bqd,bkd->bqk"}> : () -> ()
    %cst_35 = arith.constant dense<0.000000e+00> : vector<1x8x8xf32>
    %104 = tpu.matmul %99, %101, %cst_35 {dimension_numbers = #tpu.dot_dimension_numbers<[2], [2], [1], [1], [0, 0, 0, 1, 1, 1], [0], [0]>} : vector<1x8x8xf32>, vector<1x8x8xf32>, vector<1x8x8xf32> -> vector<1x8x8xf32>
    "tpu.trace_stop"() : () -> ()
    %cst_36 = arith.constant dense<0xFF800000> : vector<1x8xf32>
    %105 = vector.multi_reduction <maximumf>, %104, %cst_36 [2] : vector<1x8x8xf32> to vector<1x8xf32>
    %106 = vector.shape_cast %105 : vector<1x8xf32> to vector<1x8x1xf32>
    %107 = vector.broadcast %106 : vector<1x8x1xf32> to vector<1x8x8xf32>
    %108 = arith.subf %104, %107 : vector<1x8x8xf32>
    %109 = math.exp %108 : vector<1x8x8xf32>
    %cst_37 = arith.constant dense<0.000000e+00> : vector<1x8xf32>
    %110 = vector.multi_reduction <add>, %109, %cst_37 [2] : vector<1x8x8xf32> to vector<1x8xf32>
    %111 = vector.shape_cast %110 : vector<1x8xf32> to vector<1x8x1xf32>
    %112 = tpu.reciprocal %111 : vector<1x8x1xf32> -> vector<1x8x1xf32>
    %113 = vector.broadcast %112 : vector<1x8x1xf32> to vector<1x8x8xf32>
    %114 = arith.mulf %109, %113 : vector<1x8x8xf32>
    "tpu.trace_start"() <{level = 10 : i32, message = "bqk,bkd->bqd"}> : () -> ()
    %cst_38 = arith.constant dense<0.000000e+00> : vector<1x8x8xf32>
    %115 = tpu.matmul %114, %103, %cst_38 {dimension_numbers = #tpu.dot_dimension_numbers<[2], [1], [1], [2], [0, 0, 0, 1, 1, 2], [0], [0]>} : vector<1x8x8xf32>, vector<1x8x8xf32>, vector<1x8x8xf32> -> vector<1x8x8xf32>
    "tpu.trace_stop"() : () -> ()
    %116 = vector.shape_cast %115 : vector<1x8x8xf32> to vector<8x8xf32>
    %c24 = arith.constant 24 : index
    %c0_39 = arith.constant 0 : index
    %117 = vector.load %arg6[%c24, %c0_39] : memref<32x32xf32, #tpu.memory_space<vmem>>, vector<8x32xf32>
    %cst_40 = arith.constant dense<0.000000e+00> : vector<8x32xf32>
    %118 = tpu.matmul %116, %117, %cst_40 {dimension_numbers = #tpu.dot_dimension_numbers<[1], [0], [0], [1], [0, 0, 1, 1], [], []>} : vector<8x8xf32>, vector<8x32xf32>, vector<8x32xf32> -> vector<8x32xf32>
    %119 = arith.addf %97, %118 : vector<8x32xf32>
    %c0_41 = arith.constant 0 : index
    %c0_42 = arith.constant 0 : index
    %120 = vector.load %arg7[%c0_41, %c0_42] : memref<1x32xf32, #tpu.memory_space<vmem>>, vector<1x32xf32>
    %121 = vector.broadcast %120 : vector<1x32xf32> to vector<8x32xf32>
    %122 = arith.addf %119, %121 : vector<8x32xf32>
    %123 = arith.addf %122, %1 : vector<8x32xf32>
    %c0_43 = arith.constant 0 : index
    %c0_44 = arith.constant 0 : index
    %124 = vector.load %arg8[%c0_43, %c0_44] : memref<1x32xf32, #tpu.memory_space<vmem>>, vector<1x32xf32>
    %c0_45 = arith.constant 0 : index
    %c0_46 = arith.constant 0 : index
    %125 = vector.load %arg9[%c0_45, %c0_46] : memref<1x32xf32, #tpu.memory_space<vmem>>, vector<1x32xf32>
    %cst_47 = arith.constant dense<0.000000e+00> : vector<8xf32>
    %126 = vector.multi_reduction <add>, %123, %cst_47 [1] : vector<8x32xf32> to vector<8xf32>
    %127 = vector.shape_cast %126 : vector<8xf32> to vector<8x1xf32>
    %cst_48 = arith.constant 3.200000e+01 : f32
    %128 = vector.broadcast %cst_48 : f32 to vector<8x1xf32>
    %129 = arith.divf %127, %128 : vector<8x1xf32>
    %130 = vector.broadcast %129 : vector<8x1xf32> to vector<8x32xf32>
    %131 = arith.subf %123, %130 : vector<8x32xf32>
    %132 = arith.mulf %131, %131 : vector<8x32xf32>
    %cst_49 = arith.constant dense<0.000000e+00> : vector<8xf32>
    %133 = vector.multi_reduction <add>, %132, %cst_49 [1] : vector<8x32xf32> to vector<8xf32>
    %134 = vector.shape_cast %133 : vector<8xf32> to vector<8x1xf32>
    %cst_50 = arith.constant 3.200000e+01 : f32
    %135 = vector.broadcast %cst_50 : f32 to vector<8x1xf32>
    %136 = arith.divf %134, %135 : vector<8x1xf32>
    %137 = vector.broadcast %129 : vector<8x1xf32> to vector<8x32xf32>
    %138 = arith.subf %123, %137 : vector<8x32xf32>
    %cst_51 = arith.constant 9.99999974E-6 : f32
    %139 = vector.broadcast %cst_51 : f32 to vector<8x1xf32>
    %140 = arith.addf %136, %139 : vector<8x1xf32>
    %141 = math.rsqrt %140 : vector<8x1xf32>
    %142 = vector.broadcast %141 : vector<8x1xf32> to vector<8x32xf32>
    %143 = arith.mulf %138, %142 : vector<8x32xf32>
    %144 = vector.broadcast %124 : vector<1x32xf32> to vector<8x32xf32>
    %145 = arith.mulf %143, %144 : vector<8x32xf32>
    %146 = vector.broadcast %125 : vector<1x32xf32> to vector<8x32xf32>
    %147 = arith.addf %145, %146 : vector<8x32xf32>
    %c0_52 = arith.constant 0 : index
    %c0_53 = arith.constant 0 : index
    %148 = vector.load %arg10[%c0_52, %c0_53] : memref<32x64xf32, #tpu.memory_space<vmem>>, vector<32x64xf32>
    %cst_54 = arith.constant dense<0.000000e+00> : vector<8x64xf32>
    %149 = tpu.matmul %147, %148, %cst_54 {dimension_numbers = #tpu.dot_dimension_numbers<[1], [0], [0], [1], [0, 0, 1, 1], [], []>} : vector<8x32xf32>, vector<32x64xf32>, vector<8x64xf32> -> vector<8x64xf32>
    %c0_55 = arith.constant 0 : index
    %c0_56 = arith.constant 0 : index
    %150 = vector.load %arg11[%c0_55, %c0_56] : memref<1x64xf32, #tpu.memory_space<vmem>>, vector<1x64xf32>
    %151 = vector.broadcast %150 : vector<1x64xf32> to vector<8x64xf32>
    %152 = arith.addf %149, %151 : vector<8x64xf32>
    %cst_57 = arith.constant 0.000000e+00 : f32
    %153 = vector.broadcast %cst_57 : f32 to vector<8x64xf32>
    %154 = arith.maximumf %152, %153 : vector<8x64xf32>
    %c0_58 = arith.constant 0 : index
    %c0_59 = arith.constant 0 : index
    %155 = vector.load %arg12[%c0_58, %c0_59] : memref<64x32xf32, #tpu.memory_space<vmem>>, vector<64x32xf32>
    %cst_60 = arith.constant dense<0.000000e+00> : vector<8x32xf32>
    %156 = tpu.matmul %154, %155, %cst_60 {dimension_numbers = #tpu.dot_dimension_numbers<[1], [0], [0], [1], [0, 0, 1, 1], [], []>} : vector<8x64xf32>, vector<64x32xf32>, vector<8x32xf32> -> vector<8x32xf32>
    %c0_61 = arith.constant 0 : index
    %c0_62 = arith.constant 0 : index
    %157 = vector.load %arg13[%c0_61, %c0_62] : memref<1x32xf32, #tpu.memory_space<vmem>>, vector<1x32xf32>
    %158 = vector.broadcast %157 : vector<1x32xf32> to vector<8x32xf32>
    %159 = arith.addf %156, %158 : vector<8x32xf32>
    %160 = arith.addf %159, %123 : vector<8x32xf32>
    %161 = vector.shape_cast %160 : vector<8x32xf32> to vector<1x8x32xf32>
    %c0_63 = arith.constant 0 : index
    %c0_64 = arith.constant 0 : index
    %c0_65 = arith.constant 0 : index
    %162 = vector.load %arg14[%c0_63, %c0_64, %c0_65] : memref<1x8x32xf32, #tpu.memory_space<vmem>>, vector<1x8x32xf32>
    tpu.vector_store %arg14[%c0_63, %c0_64, %c0_65], %161 {strides = array<i32>} : memref<1x8x32xf32, #tpu.memory_space<vmem>>, vector<1x8x32xf32>,
    return
  }
  func.func @transform_0(%arg0: i32) -> (i32, i32, i32) {
    %c0_i32 = arith.constant 0 : i32
    %c0_i32_0 = arith.constant 0 : i32
    %c0_i32_1 = arith.constant 0 : i32
    return %arg0, %c0_i32, %c0_i32_0 : i32, i32, i32
  }
  func.func @transform_1(%arg0: i32) -> (i32, i32) {
    %c0_i32 = arith.constant 0 : i32
    %c0_i32_0 = arith.constant 0 : i32
    %c0_i32_1 = arith.constant 0 : i32
    return %c0_i32, %c0_i32_0 : i32, i32
  }
  func.func @transform_2(%arg0: i32) -> (i32, i32) {
    %c0_i32 = arith.constant 0 : i32
    %c0_i32_0 = arith.constant 0 : i32
    %c0_i32_1 = arith.constant 0 : i32
    return %c0_i32, %c0_i32_0 : i32, i32
  }
  func.func @transform_3(%arg0: i32) -> (i32, i32) {
    %c0_i32 = arith.constant 0 : i32
    %c0_i32_0 = arith.constant 0 : i32
    %c0_i32_1 = arith.constant 0 : i32
    return %c0_i32, %c0_i32_0 : i32, i32
  }
  func.func @transform_4(%arg0: i32) -> (i32, i32) {
    %c0_i32 = arith.constant 0 : i32
    %c0_i32_0 = arith.constant 0 : i32
    %c0_i32_1 = arith.constant 0 : i32
    return %c0_i32, %c0_i32_0 : i32, i32
  }
  func.func @transform_5(%arg0: i32) -> (i32, i32) {
    %c0_i32 = arith.constant 0 : i32
    %c0_i32_0 = arith.constant 0 : i32
    %c0_i32_1 = arith.constant 0 : i32
    return %c0_i32, %c0_i32_0 : i32, i32
  }
  func.func @transform_6(%arg0: i32) -> (i32, i32) {
    %c0_i32 = arith.constant 0 : i32
    %c0_i32_0 = arith.constant 0 : i32
    %c0_i32_1 = arith.constant 0 : i32
    return %c0_i32, %c0_i32_0 : i32, i32
  }
  func.func @transform_7(%arg0: i32) -> (i32, i32) {
    %c0_i32 = arith.constant 0 : i32
    %c0_i32_0 = arith.constant 0 : i32
    %c0_i32_1 = arith.constant 0 : i32
    return %c0_i32, %c0_i32_0 : i32, i32
  }
  func.func @transform_8(%arg0: i32) -> (i32, i32) {
    %c0_i32 = arith.constant 0 : i32
    %c0_i32_0 = arith.constant 0 : i32
    %c0_i32_1 = arith.constant 0 : i32
    return %c0_i32, %c0_i32_0 : i32, i32
  }
  func.func @transform_9(%arg0: i32) -> (i32, i32) {
    %c0_i32 = arith.constant 0 : i32
    %c0_i32_0 = arith.constant 0 : i32
    %c0_i32_1 = arith.constant 0 : i32
    return %c0_i32, %c0_i32_0 : i32, i32
  }
  func.func @transform_10(%arg0: i32) -> (i32, i32) {
    %c0_i32 = arith.constant 0 : i32
    %c0_i32_0 = arith.constant 0 : i32
    %c0_i32_1 = arith.constant 0 : i32
    return %c0_i32, %c0_i32_0 : i32, i32
  }
  func.func @transform_11(%arg0: i32) -> (i32, i32) {
    %c0_i32 = arith.constant 0 : i32
    %c0_i32_0 = arith.constant 0 : i32
    %c0_i32_1 = arith.constant 0 : i32
    return %c0_i32, %c0_i32_0 : i32, i32
  }
  func.func @transform_12(%arg0: i32) -> (i32, i32) {
    %c0_i32 = arith.constant 0 : i32
    %c0_i32_0 = arith.constant 0 : i32
    %c0_i32_1 = arith.constant 0 : i32
    return %c0_i32, %c0_i32_0 : i32, i32
  }
  func.func @transform_13(%arg0: i32) -> (i32, i32, i32) {
    %c0_i32 = arith.constant 0 : i32
    %c0_i32_0 = arith.constant 0 : i32
    %c0_i32_1 = arith.constant 0 : i32
    return %arg0, %c0_i32, %c0_i32_0 : i32, i32, i32
  }
}

</mosaic_0001>

<bundles_post_ra>
// kernel: tpu_custom_call.1
= control target key start
LH: loop header
LB: loop body
LE: loop exit
PB: predicated region body
PF: predicated region fallthrough
CT: control target
= control target key end

     0   :  { %18 = vsyncpa [#allocation3], 0  ;;  %s2648_s0 = inlined_call_operand.hbm [shape: f32[2,8,32], index: 0, kind: input, shape index: {}]   ;;  %s2649_s1 = inlined_call_operand.vmem [shape: f32[1,32], index: 1, kind: input, shape index: {}]   ;;  %s2650_s2 = inlined_call_operand.vmem [shape: f32[1,32], index: 2, kind: input, shape index: {}]   ;;  %s2651_s3 = inlined_call_operand.vmem [shape: f32[32,96], index: 3, kind: input, shape index: {}]   ;;  %s2652_s4 = inlined_call_operand.vmem [shape: f32[1,96], index: 4, kind: input, shape index: {}]   ;;  %s2653_s5 = inlined_call_operand.vmem [shape: f32[32,32], index: 5, kind: input, shape index: {}]   ;;  %s2654_s6 = inlined_call_operand.vmem [shape: f32[1,32], index: 6, kind: input, shape index: {}]   ;;  %s2655_s7 = inlined_call_operand.vmem [shape: f32[1,32], index: 7, kind: input, shape index: {}]   ;;  %s2656_s8 = inlined_call_operand.vmem [shape: f32[1,32], index: 8, kind: input, shape index: {}]   ;;  %s2657_s9 = inlined_call_operand.vmem [shape: f32[32,64], index: 9, kind: input, shape index: {}]   ;;  %s2658_s10 = inlined_call_operand.vmem [shape: f32[1,64], index: 10, kind: input, shape index: {}]   ;;  %s2659_s11 = inlined_call_operand.vmem [shape: f32[64,32], index: 11, kind: input, shape index: {}]   ;;  %s2660_s12 = inlined_call_operand.vmem [shape: f32[1,32], index: 12, kind: input, shape index: {}]   ;;  %s2661_s13 = inlined_call_operand.hbm [shape: f32[2,8,32], index: 13, kind: output, shape index: {}]  }
   0x1   :  { %20 = vsyncpa [#allocation3 + $0x1], 0 }
   0x2   :  { %21 = vsyncpa [#allocation4], 0 }
   0x3   :  { %23 = vsyncpa [#allocation4 + $0x1], 0  ;;  %s2299_s25 = smov 0   ;;  %s2301_s26 = smov 0  }
   0x4   :  { %s2303_s27 = smov 0   ;;  %s2305_s28 = smov 0  }
   0x5 LB: > { %2667 = sst [smem:[#allocation8_spill]] %s2199_s25  ;;  %s2320_s29 = sadd.s32 4294967295, %s2211_s28   ;;  %s2211_s28 = sphi %s2305_s28, %s2682_s28   ;;  %s2207_s27 = sphi %s2303_s27, %s2684_s27   ;;  %s2203_s26 = sphi %s2301_s26, %s2686_s26   ;;  %s2199_s25 = sphi %s2299_s25, %s2685_s25  }
   0x6   : > { %2668 = sst [smem:[#allocation9_spill]] %s2207_s27  ;;  %s1828_s30 = sadd.s32 4294967294, %s2211_s28  }
   0x7   : > { %s2324_s14 = sadd.s32 1, %s2211_s28   ;;  %s36_s15 = sadd.s32 1, %s2207_s27 }
   0x8   : > { %2669 = sst [smem:[#allocation10_spill]] %s2324_s14  ;;  %s33_s16 = ssub.s32 %s2211_s28, %s2324_s14 }
   0x9   : > { %p43_p0 = scmp.ne.s32.totalorder %s2207_s27, %s2203_s26  ;;  %p34_p1 = scmp.eq.s32.totalorder %s33_s16, 0 }
   0xa   : > { %p44_p2 = scmp.eq.s32.totalorder %s2211_s28, 0  ;;  %p49_p3 = scmp.ne.s32.totalorder %s2203_s26, %s2199_s25 }
   0xb   : > { %p50_p4 = scmp.eq.s32.totalorder %s2320_s29, 0  ;;  %p325_p7 = scmp.eq.s32.totalorder %s2320_s29, 1 }
   0xc   : > { %s2336_s17 = scalar_select %p34_p1, %s2207_s27, %s36_s15  }
   0xd   : > { %p2338_p5 = por %p44_p2, %p43_p0  ;;  %p2342_p6 = por %p50_p4, %p49_p3 }
   0xe   : > { %2670 = sst [smem:[#allocation11_spill]] %s2336_s17  ;;  %p331_p8 = scmp.eq.s32.totalorder %s1828_s30, 1 }
   0xf   : > { %p2047_p10 = scmp.lt.s32.totalorder %s2211_s28, 2  ;;  %p2349_p11 = por %p325_p7, %p43_p0 }
  0x10   : > { %p2353_p12 = por %p331_p8, %p49_p3  ;;  %s387_s22 = sand.u32 1, %s2207_s27  }
  0x11   : > { %s2673_s20 = scalar_select %p2349_p11, 1, 0 }
  0x12   : > { %s2674_s21 = scalar_select %p2353_p12, 1, 0 }
  0x13   : > { %s1832_s23 = sshll.u32 %s2211_s28, 7  ;;  %s1831_s24 = sshll.u32 %s387_s22, 3 }
  0x14   : > { %s2362_s17 = scalar_lea.hbm %s2648_s0, %s1832_s23  ;;  %s391_s30 = scalar_lea.vmem [#allocation2], %s1831_s24 }
  0x15   : > { %s398_s14 = sshll.u32 %s391_s30, 4  ;;  %p2366_p13 = pnand %p2047_p10, %p2338_p5  ;;  %s2370_s14 = int_to_ptr.vmem [resolvable:$true] %s398_s14 }
  0x16   : > { %s388_s15 = scalar_lea.sflag [#allocation3], %s387_s22  ;;  %s2115_s23 = scalar_lea.hbm %s2362_s17, 128 }
  0x17   : > { %p2116_p2 = scmp.ne.s32.totalorder %s2362_s17, %s2115_s23  ;;  %p2117_p3 = pneg %p2366_p13 }
  0x18   : > { %s2120_s16 = scalar_lea.hbm %s2648_s0, 256  ;;  %p2121_p5 = scmp.lt.u32.totalorder %s2362_s17, %s2648_s0 }
  0x19   : > { %p2118_p4 = pnand %p2117_p3, %p2116_p2  ;;  %p2122_p8 = scmp.lt.u32.totalorder %s2120_s16, %s2115_s23 }
  0x1a   : > { %p2124_p9 = scmp.lt.u32.totalorder %s2115_s23, %s2362_s17 }
  0x1b   : > { %p2119_p7 = pneg %p2118_p4  ;;  %p2123_p10 = por %p2122_p8, %p2121_p5 }
  0x1d   : > { %p2125_p0 = por %p2124_p9, %p2123_p10 }
  0x1f   : > { %p2126_p1 = pnand %p2125_p0, %p2119_p7 }
  0x21   : > { %2129 = shalt.err (!%p2126_p1)
}
  0x22   : > { %s2130_s22 = scalar_lea.vmem %s2370_s14, 128  ;;  %s2213_s18 = smov [#allocation2]  }
  0x23   : > { %p2131_p2 = scmp.ne.s32.totalorder %s2370_s14, %s2130_s22  ;;  %s2135_s24 = sshll.u32 %s2213_s18, 4  ;;  %s2136_s24 = int_to_ptr.vmem [resolvable:$false] %s2135_s24 }
  0x24   : > { %s2137_s27 = scalar_lea.vmem %s2136_s24, 256  ;;  %p2138_p11 = scmp.lt.s32.totalorder %s2370_s14, %s2136_s24 }
  0x25   : > { %p2133_p4 = pnand %p2131_p2, %p2117_p3  ;;  %p2139_p5 = scmp.lt.s32.totalorder %s2137_s27, %s2130_s22 }
  0x27   : > { %p2134_p12 = pneg %p2133_p4  ;;  %p2140_p8 = por %p2139_p5, %p2138_p11 }
  0x29   : > { %p2141_p9 = pnand %p2140_p8, %p2134_p12 }
  0x2b   : > { %2144 = shalt.err (!%p2141_p9)
}
  0x2c   : > { %2042 = dma.hbm_to_vmem [thread:$0]  (!%p2366_p13), %s2362_s17, 128, %s2370_s14, %s388_s15  }
  0x2d   : > { %p2676_p0 = scmp.lt.s32.totalorder %s2211_s28, 3  ;;  %p2677_p1 = scmp.ge.s32.totalorder %s2211_s28, 1 }
  0x2f   : > { %p404_p3 = pnand %p2677_p1, %p2676_p0 }
  0x30   : > { %s2404_s23 = sand.u32 (!%p404_p3), 1, %s2203_s26  }
  0x31   : > { %407 = sbr.rel (%p404_p3) target bundleno = 3694 (0xe6e), region = 72  ;;  %s1834_s16 = sshll.u32 (!%p404_p3), %s2404_s23, 3 }
  0x32   : > { %s410_s30 = scalar_lea.sflag (!%p404_p3), [#allocation3], %s2404_s23  ;;  %s413_s25 = scalar_lea.vmem (!%p404_p3), [#allocation2], %s1834_s16 }
  0x38   : > { %2190 = dma.done.wait (%p2342_p6), %s410_s30, 128  }
  0x39   : > { %2192 = vsyncadd (%p2342_p6), %s410_s30, 4294967168  ;;  %vm459_vm0 = vcmask 261120   ;;  %v2414_v0 = vld [vmem:[%s413_s25] sm:$0xff]  ;;  %v490_v9 = vld [vmem:[%s2651_s3 + $0x10] sm:$0xff]  ;;  %v2214_v10 = vmov 0.0|0.0   ;;  %vm2215_vm1 = vmmov 0  }
  0x3a   : > { %v460_v1 = vsel %vm459_vm0, %v2414_v0, 0.0  ;;  %v488_v7 = vld [vmem:[%s2651_s3] sm:$0xff]  ;;  %v489_v8 = vld [vmem:[%s2651_s3 + $0x8] sm:$0xff]  ;;  %2011 = vmatprep.subr.bf16.mxu0 %v2214_v10  ;;  %v491_v12 = vld [vmem:[%s2651_s3 + $0x18] sm:$0xff]  ;;  %v2216_v13 = vmov 0.0   ;;  %s2217_s22 = smov 120  }
  0x3b   : > { %461 = vadd.xlane.f32.xlu0 %v460_v1  ;;  %v2012_v11 = vpack.c.bf16 %v489_v8, %v488_v7  ;;  %1918 = vmatprep.mubr.msk.f32.mxu0 %vm2215_vm1, %v2216_v13  ;;  %v2015_v14 = vpack.c.bf16 %v491_v12, %v490_v9  ;;  %v1836_v19 = vld [vmem:[%s2649_s1] ss:$0 sm:$0xff]  ;;  %s2218_s18 = smov 96   ;;  %s2219_s24 = smov 88   ;;  %vm575_vm2 = vcmask 64512   ;;  %v903_v47 = vld [vmem:[%s2653_s5 + $0x8] sm:$0xff] }
  0x3c   : > { %1926 = vmatprep.subr.mxu1 %v2216_v13  ;;  %1928 = vmatprep.mubr.msk.f32.mxu1 %vm2215_vm1, %v2216_v13  ;;  %v1837_v21 = vld [vmem:[%s2650_s2] ss:$0 sm:$0xff]  ;;  %s2220_s27 = smov 56   ;;  %s2221_s30 = smov 64   ;;  %vm1668_vm3 = vcmask 523264  }
  0x3d   : > { %2013 = vmatpush3.bf16.msra.mxu0 %v2012_v11  ;;  %v1838_v24 = vld [vmem:[%s2652_s4] ss:$0 sm:$0xff]  ;;  %s2222_s25 = smov 80   ;;  %s2223_s14 = smov 112  }
  0x3e   : > { %2014 = vmatprep.subr.bf16.mxu0 %v2214_v10  ;;  %v737_v56 = vld [vmem:[%s2653_s5] sm:$0xff]  ;;  %s1745_s15 = scalar_lea.sflag [#allocation4], %s2404_s23  ;;  %p2678_p11 = scmp.ne.s32.totalorder %s2673_s20, 0 }
  0x41   : > { %2016 = vmatpush3.bf16.msra.mxu0 %v2015_v14 }
  0x42   : > { %1921 = vmatprep.subr.mxu0 %v2216_v13 }
  0xc8   : > { %v462_v2 = vpop.xlane.xlu0 %461 }
  0xc9   : > { %v464_v3 = vmul.f32 0.03125, %v462_v2 }
  0xcb   : > { %v465_v4 = vsub.f32 %v2414_v0, %v464_v3 }
  0xcd   : > { %v466_v5 = vmul.f32 %v465_v4, %v465_v4 }
  0xcf   : > { %v467_v6 = vsel %vm459_vm0, %v466_v5, 0.0 }
  0xd0   : > { %468 = vadd.xlane.f32.xlu0 %v467_v6 }
 0x15d   : > { %v469_v15 = vpop.xlane.xlu0 %468 }
 0x15e   : > { %v470_v16 = vmul.f32 0.03125, %v469_v15 }
 0x160   : > { %v471_v17 = vadd.f32 1e-05, %v470_v16 }
 0x162   : > { %2095 = vrsqrt.f32 %v471_v17 }
 0x16c   : > { %v2096_v18 = vpop.eup %2095 }
 0x16d   : > { %v473_v20 = vmul.f32 %v2096_v18, %v465_v4 }
 0x16f   : > { %v480_v22 = vmul.f32 %v1836_v19, %v473_v20 }
 0x171   : > { %v487_v23 = vadd.f32 %v1837_v21, %v480_v22  ;;  %v1215_v21 = vld [vmem:[%s2653_s5 + $0x10] sm:$0xff] }
 0x173   : > { %1919 = vmatmul.mubr.msk.f32.vlgmr.msra.gmra.mrb[0].mxu0 %vm459_vm0, %v487_v23 }
 0x174   : > { %1923 = vmatprep.mubr.msk.f32.mxu0 %vm2215_vm1, %v2216_v13 }
 0x246   : > { %v568_v25 = vpop.f32.mrb[0].mxu0 }
 0x247   : > { %v2452_v26 = vadd.f32 %v1838_v24, %v568_v25  ;;  %v1920_v27 = vpop.f32.mrb[1].mxu0 }
 0x249   : > { %738 = vrot.lane.b32.xlu0 %v2452_v26, %s2217_s22  ;;  %573 = vrot.lane.b32.xlu1 %v2452_v26, %s2218_s18  ;;  %s2224_s18 = smov 48  }
 0x24d   : > { %740 = vrot.lane.b32.xlu1 %v2452_v26, %s2219_s24  ;;  %s2225_s24 = smov 104  }
 0x2bb   : > { %v574_v28 = vpop.permute.xlu1 %573  ;;  %v739_v30 = vpop.permute.xlu0 %738 }
 0x2bc   : > { %1922 = vmatpush3.xpose.msk.msra.mxu0 %vm575_vm2, %v574_v28 }
 0x2bd   : > { %1931 = vmatprep.subr.mxu0 %v2216_v13 }
 0x2bf   : > { %1924 = vmatmul.mubr.msk.f32.vlgmr.msra.gmra.mrb[2].mxu0 %vm575_vm2, %v2452_v26  ;;  %v741_v29 = vpop.permute.xlu1 %740 }
 0x2c0   : > { %1932 = vmatpush3.xpose.msk.msra.mxu0 %vm575_vm2, %v741_v29  ;;  %1933 = vmatprep.mubr.msk.f32.mxu0 %vm2215_vm1, %v2216_v13 }
 0x2c1   : > { %1941 = vmatprep.subr.mxu0 %v2216_v13 }
 0x2c3   : > { %1934 = vmatmul.mubr.msk.f32.vlgmr.msra.gmra.mrb[4].mxu0 %vm575_vm2, %v739_v30 }
 0x2c4   : > { %1943 = vmatprep.mubr.msk.f32.mxu0 %vm2215_vm1, %v2216_v13  ;;  %1942 = vmatpush3.msra.mxu0 %v903_v47 }
 0x2c5   : > { %1951 = vmatprep.subr.mxu0 %v2216_v13 }
 0x392   : > { %v646_v31 = vpop.f32.mrb[2].mxu0 }
 0x393   : > { %v1925_v32 = vpop.f32.mrb[3].mxu0  ;;  %v650_v33 = vsel %vm575_vm2, %v646_v31, -inf }
 0x394   : > { %651 = vmax.xlane.f32.xlu1 %v650_v33  ;;  %v1455_v33 = vld [vmem:[%s2653_s5 + $0x18] sm:$0xff] }
 0x396   : > { %v812_v34 = vpop.f32.mrb[4].mxu0 }
 0x397   : > { %v1935_v35 = vpop.f32.mrb[5].mxu0  ;;  %v816_v36 = vsel %vm575_vm2, %v812_v34, -inf }
 0x398   : > { %817 = vmax.xlane.f32.xlu0 %v816_v36 }
 0x3ae   : > { %827 = vrot.lane.b32.xlu0 %v2452_v26, %s2220_s27  ;;  %s2226_s27 = smov 72  }
 0x421   : > { %v652_v37 = vpop.xlane.xlu1 %651 }
 0x422   : > { %v653_v38 = vsub.f32 %v646_v31, %v652_v37 }
 0x424   : > { %v654_v39 = vmul.f32 1.442695, %v653_v38 }
 0x425   : > { %v818_v40 = vpop.xlane.xlu0 %817 }
 0x426   : > { %2097 = vpow2.f32 %v654_v39  ;;  %v819_v41 = vsub.f32 %v812_v34, %v818_v40 }
 0x428   : > { %v820_v42 = vmul.f32 1.442695, %v819_v41 }
 0x429   : > { %v828_v53 = vpop.permute.xlu0 %827 }
 0x42a   : > { %2099 = vpow2.f32 %v820_v42 }
 0x430   : > { %v2098_v43 = vpop.eup %2097 }
 0x431   : > { %v656_v44 = vsel %vm575_vm2, %v2098_v43, 0.0 }
 0x432   : > { %657 = vadd.xlane.f32.xlu1 %v656_v44 }
 0x434   : > { %v2100_v45 = vpop.eup %2099 }
 0x435   : > { %v822_v46 = vsel %vm575_vm2, %v2100_v45, 0.0 }
 0x436   : > { %823 = vadd.xlane.f32.xlu1 %v822_v46 }
 0x447   : > { %661 = vrot.lane.b32.xlu1 %v2452_v26, %s2221_s30  ;;  %s455_s30 = scalar_lea.vmem [#allocation5], %s1834_s16  ;;  %s2228_s16 = smov [#allocation5]  }
 0x448   : > { %s2149_s22 = sshll.u32 %s2228_s16, 4  ;;  %s2150_s22 = int_to_ptr.vmem [resolvable:$false] %s2149_s22 }
 0x44b   : > { %1052 = vrot.lane.b32.xlu1 %v2452_v26, %s2222_s25  ;;  %s1758_s25 = sshll.u32 %s455_s30, 4  ;;  %s2605_s25 = int_to_ptr.vmem [resolvable:$true] %s1758_s25 }
 0x44c   : > { %p2152_p7 = scmp.lt.s32.totalorder %s2605_s25, %s2150_s22 }
 0x44f   : > { %1050 = vrot.lane.b32.xlu1 %v2452_v26, %s2223_s14  ;;  %s2227_s14 = smov 40  }
 0x4bf   : > { %v658_v48 = vpop.xlane.xlu1 %657 }
 0x4c0   : > { %2101 = vrcp.f32 %v658_v48 }
 0x4c3   : > { %v824_v49 = vpop.xlane.xlu1 %823 }
 0x4c4   : > { %2103 = vrcp.f32 %v824_v49 }
 0x4c7   : > { %v662_v50 = vpop.permute.xlu1 %661 }
 0x4c8   : > { %1927 = vmatpush3.msra.mxu1 %v662_v50 }
 0x4c9   : > { %1936 = vmatprep.subr.mxu1 %v2216_v13 }
 0x4ca   : > { %v2102_v51 = vpop.eup %2101 }
 0x4cb   : > { %v660_v52 = vmul.f32 %v2102_v51, %v2098_v43  ;;  %v1053_v59 = vpop.permute.xlu1 %1052  ;;  %v1856_v43 = vld [vmem:[%s2654_s6] ss:$0 sm:$0xff] }
 0x4cd   : > { %1929 = vmatmul.mubr.msk.f32.vlgmr.msra.gmra.mrb[0].mxu1 %vm575_vm2, %v660_v52 }
 0x4ce   : > { %v2104_v54 = vpop.eup %2103  ;;  %1937 = vmatpush3.msra.mxu1 %v828_v53  ;;  %1938 = vmatprep.mubr.msk.f32.mxu1 %vm2215_vm1, %v2216_v13 }
 0x4cf   : > { %v826_v55 = vmul.f32 %v2104_v54, %v2100_v45  ;;  %1946 = vmatprep.subr.mxu1 %v2216_v13  ;;  %v1051_v62 = vpop.permute.xlu1 %1050  ;;  %v1569_v54 = vld [vmem:[%s2657_s9 + $0x8] sm:$0xff] }
 0x4d1   : > { %1939 = vmatmul.mubr.msk.f32.vlgmr.msra.gmra.mrb[2].mxu1 %vm575_vm2, %v826_v55 }
 0x4d2   : > { %1948 = vmatprep.mubr.msk.f32.mxu1 %vm2215_vm1, %v2216_v13  ;;  %1947 = vmatpush3.msra.mxu1 %v737_v56  ;;  %v1571_v56 = vld [vmem:[%s2657_s9 + $0x18] sm:$0xff] }
 0x4d3   : > { %1956 = vmatprep.subr.mxu1 %v2216_v13 }
 0x5a0   : > { %v733_v57 = vpop.f32.mrb[0].mxu1 }
 0x5a1   : > { %v1930_v58 = vpop.f32.mrb[1].mxu1  ;;  %1949 = vmatmul.mubr.msk.f32.vlgmr.msra.gmra.mrb[4].mxu1 %vm575_vm2, %v733_v57 }
 0x5a2   : > { %1958 = vmatprep.mubr.msk.f32.mxu1 %vm2215_vm1, %v2216_v13  ;;  %v1653_v58 = vld [vmem:[%s2659_s11] sm:$0xff] }
 0x5a4   : > { %v899_v60 = vpop.f32.mrb[2].mxu1 }
 0x5a5   : > { %v1940_v61 = vpop.f32.mrb[3].mxu1  ;;  %1944 = vmatmul.mubr.msk.f32.vlgmr.msra.gmra.mrb[6].mxu0 %vm575_vm2, %v899_v60  ;;  %v1655_v60 = vld [vmem:[%s2659_s11 + $0x10] sm:$0xff] }
 0x5a6   : > { %1952 = vmatpush3.xpose.msk.msra.mxu0 %vm575_vm2, %v1053_v59  ;;  %1953 = vmatprep.mubr.msk.f32.mxu0 %vm2215_vm1, %v2216_v13  ;;  %v1654_v59 = vld [vmem:[%s2659_s11 + $0x8] sm:$0xff] }
 0x5a7   : > { %1961 = vmatprep.subr.mxu0 %v2216_v13  ;;  %v2024_v61 = vpack.c.bf16 %v1654_v59, %v1653_v58 }
 0x5a9   : > { %1954 = vmatmul.mubr.msk.f32.vlgmr.msra.gmra.mrb[8].mxu0 %vm575_vm2, %v1051_v62  ;;  %v1656_v62 = vld [vmem:[%s2659_s11 + $0x18] sm:$0xff] }
 0x5aa   : > { %1963 = vmatprep.mubr.msk.f32.mxu0 %vm2215_vm1, %v2216_v13  ;;  %1962 = vmatpush3.msra.mxu0 %v1215_v21 }
 0x5ab   : > { %1971 = vmatprep.subr.mxu0 %v2216_v13 }
 0x674   : > { %v1046_v63 = vpop.f32.mrb[4].mxu1 }
 0x675   : > { %v1950_v1 = vpop.f32.mrb[5].mxu1 }
 0x676   : > { %v1657_v1 = vld [vmem:[%s2659_s11 + $0x20] sm:$0xff] }
 0x678   : > { %v973_v2 = vpop.f32.mrb[6].mxu0 }
 0x679   : > { %v1047_v3 = vadd.f32 %v1046_v63, %v973_v2  ;;  %v1945_v4 = vpop.f32.mrb[7].mxu0  ;;  %v2027_v63 = vpack.c.bf16 %v1656_v62, %v1655_v60  ;;  %v1658_v2 = vld [vmem:[%s2659_s11 + $0x28] sm:$0xff] }
 0x67c   : > { %v1124_v5 = vpop.f32.mrb[8].mxu0 }
 0x67d   : > { %v1955_v6 = vpop.f32.mrb[9].mxu0  ;;  %v1128_v7 = vsel %vm575_vm2, %v1124_v5, -inf }
 0x67e   : > { %1129 = vmax.xlane.f32.xlu1 %v1128_v7 }
 0x68f   : > { %1139 = vrot.lane.b32.xlu1 %v2452_v26, %s2224_s18  ;;  %s2151_s18 = scalar_lea.vmem %s2150_s22, 256 }
 0x693   : > { %1290 = vrot.lane.b32.xlu1 %v2452_v26, %s2225_s24 }
 0x70b   : > { %v1130_v8 = vpop.xlane.xlu1 %1129 }
 0x70c   : > { %v1131_v9 = vsub.f32 %v1124_v5, %v1130_v8  ;;  %v1857_v8 = vld [vmem:[%s2655_s7] ss:$0 sm:$0xff] }
 0x70e   : > { %v1132_v11 = vmul.f32 1.442695, %v1131_v9 }
 0x70f   : > { %v1140_v12 = vpop.permute.xlu1 %1139 }
 0x710   : > { %2105 = vpow2.f32 %v1132_v11  ;;  %1957 = vmatpush3.msra.mxu1 %v1140_v12  ;;  %v1858_v11 = vld [vmem:[%s2656_s8] ss:$0 sm:$0xff] }
 0x711   : > { %1966 = vmatprep.subr.mxu1 %v2216_v13 }
 0x713   : > { %v1291_v20 = vpop.permute.xlu1 %1290 }
 0x71a   : > { %v2106_v14 = vpop.eup %2105 }
 0x71b   : > { %v1134_v15 = vsel %vm575_vm2, %v2106_v14, 0.0 }
 0x71c   : > { %1135 = vadd.xlane.f32.xlu0 %v1134_v15  ;;  %v1660_v15 = vld [vmem:[%s2659_s11 + $0x38] sm:$0xff] }
 0x732   : > { %1292 = vrot.lane.b32.xlu0 %v2452_v26, %s2226_s27  ;;  %s1864_s27 = sshll.u32 %s2320_s29, 7  ;;  %s2145_s29 = scalar_lea.vmem %s2605_s25, 128 }
 0x733   : > { %s2603_s19 = scalar_lea.hbm %s2661_s13, %s1864_s27  ;;  %p2146_p6 = scmp.ne.s32.totalorder %s2605_s25, %s2145_s29 }
 0x734   : > { %p2153_p10 = scmp.lt.s32.totalorder %s2151_s18, %s2145_s29 }
 0x735   : > { %p2147_p12 = pnand %p2146_p6, %p2678_p11 }
 0x736   : > { %p2154_p2 = por %p2153_p10, %p2152_p7 }
 0x737   : > { %p2148_p13 = pneg %p2147_p12 }
 0x739   : > { %p2155_p4 = pnand %p2154_p2, %p2148_p13 }
 0x7a9   : > { %v1136_v16 = vpop.xlane.xlu0 %1135 }
 0x7aa   : > { %2107 = vrcp.f32 %v1136_v16 }
 0x7ad   : > { %v1293_v19 = vpop.permute.xlu0 %1292 }
 0x7b4   : > { %v2108_v17 = vpop.eup %2107 }
 0x7b5   : > { %v1138_v18 = vmul.f32 %v2108_v17, %v2106_v14  ;;  %v1859_v17 = vld [vmem:[%s2658_s10] ss:$0 sm:$0xff] }
 0x7b7   : > { %1959 = vmatmul.mubr.msk.f32.vlgmr.msra.gmra.mrb[6].mxu1 %vm575_vm2, %v1138_v18 }
 0x7b8   : > { %1967 = vmatpush3.xpose.msk.msra.mxu1 %vm575_vm2, %v1293_v19  ;;  %1968 = vmatprep.mubr.msk.f32.mxu1 %vm2215_vm1, %v2216_v13 }
 0x7b9   : > { %1976 = vmatprep.subr.mxu1 %v2216_v13 }
 0x7bb   : > { %1969 = vmatmul.mubr.msk.f32.vlgmr.msra.gmra.mrb[8].mxu1 %vm575_vm2, %v1291_v20 }
 0x7bc   : > { %1978 = vmatprep.mubr.msk.f32.mxu1 %vm2215_vm1, %v2216_v13  ;;  %1977 = vmatpush3.msra.mxu1 %v1455_v33 }
 0x7bd   : > { %2023 = vmatprep.subr.bf16.mxu1 %v2214_v10 }
 0x88a   : > { %v1211_v22 = vpop.f32.mrb[6].mxu1 }
 0x88b   : > { %v1960_v23 = vpop.f32.mrb[7].mxu1  ;;  %1964 = vmatmul.mubr.msk.f32.vlgmr.msra.gmra.mrb[10].mxu0 %vm575_vm2, %v1211_v22  ;;  %v1861_v22 = vld [vmem:[%s2660_s12] ss:$0 sm:$0xff] }
 0x88c   : > { %1973 = vmatprep.mubr.msk.f32.mxu0 %vm2215_vm1, %v2216_v13 }
 0x88e   : > { %v1364_v24 = vpop.f32.mrb[8].mxu1 }
 0x88f   : > { %v1970_v25 = vpop.f32.mrb[9].mxu1  ;;  %v1368_v27 = vsel %vm575_vm2, %v1364_v24, -inf }
 0x890   : > { %1369 = vmax.xlane.f32.xlu1 %v1368_v27 }
 0x91d   : > { %v1370_v28 = vpop.xlane.xlu1 %1369 }
 0x91e   : > { %v1371_v29 = vsub.f32 %v1364_v24, %v1370_v28 }
 0x920   : > { %v1372_v30 = vmul.f32 1.442695, %v1371_v29 }
 0x922   : > { %2109 = vpow2.f32 %v1372_v30 }
 0x92c   : > { %v2110_v31 = vpop.eup %2109 }
 0x92d   : > { %v1374_v32 = vsel %vm575_vm2, %v2110_v31, 0.0 }
 0x92e   : > { %1375 = vadd.xlane.f32.xlu0 %v1374_v32 }
 0x944   : > { %1379 = vrot.lane.b32.xlu0 %v2452_v26, %s2227_s14 }
 0x95e   : > { %v1285_v34 = vpop.f32.mrb[10].mxu0 }
 0x95f   : > { %v1289_v35 = vadd.f32 %v1285_v34, %v1047_v3  ;;  %v1965_v36 = vpop.f32.mrb[11].mxu0  ;;  %v2030_v3 = vpack.c.bf16 %v1658_v2, %v1657_v1 }
 0x9bb   : > { %v1376_v37 = vpop.xlane.xlu0 %1375 }
 0x9bc   : > { %2111 = vrcp.f32 %v1376_v37 }
 0x9bf   : > { %v1380_v38 = vpop.permute.xlu0 %1379 }
 0x9c0   : > { %1972 = vmatpush3.msra.mxu0 %v1380_v38 }
 0x9c1   : > { %2017 = vmatprep.subr.bf16.mxu0 %v2214_v10 }
 0x9c6   : > { %v2112_v39 = vpop.eup %2111 }
 0x9c7   : > { %v1378_v40 = vmul.f32 %v2112_v39, %v2110_v31 }
 0x9c9   : > { %1974 = vmatmul.mubr.msk.f32.vlgmr.msra.gmra.mrb[12].mxu0 %vm575_vm2, %v1378_v40 }
 0x9ca   : > { %1989 = vmatprep.mubr.msk.f32.mxu0 %vm2215_vm1, %v2216_v13 }
 0xa9c   : > { %v1451_v26 = vpop.f32.mrb[12].mxu0 }
 0xa9d   : > { %v1975_v41 = vpop.f32.mrb[13].mxu0  ;;  %1979 = vmatmul.mubr.msk.f32.vlgmr.msra.gmra.mrb[10].mxu1 %vm575_vm2, %v1451_v26 }
 0xa9e   : > { %2008 = vmatprep.mubr.msk.f32.mxu1 %vm2215_vm1, %v2216_v13  ;;  %v1568_v13 = vld [vmem:[%s2657_s9] sm:$0xff]  ;;  %2025 = vmatpush3.bf16.msra.mxu1 %v2024_v61 }
 0xa9f   : > { %v2018_v55 = vpack.c.bf16 %v1569_v54, %v1568_v13  ;;  %2026 = vmatprep.subr.bf16.mxu1 %v2214_v10 }
 0xaa1   : > { %2019 = vmatpush3.bf16.msra.mxu0 %v2018_v55 }
 0xaa2   : > { %2020 = vmatprep.subr.bf16.mxu0 %v2214_v10  ;;  %2028 = vmatpush3.bf16.msra.mxu1 %v2027_v63 }
 0xaa3   : > { %2029 = vmatprep.subr.bf16.mxu1 %v2214_v10 }
 0xaa6   : > { %2031 = vmatpush3.bf16.msra.mxu1 %v2030_v3 }
 0xaa7   : > { %2032 = vmatprep.subr.bf16.mxu1 %v2214_v10  ;;  %v1659_v10 = vld [vmem:[%s2659_s11 + $0x30] sm:$0xff] }
 0xaa8   : > { %v2033_v16 = vpack.c.bf16 %v1660_v15, %v1659_v10 }
 0xaaa   : > { %2034 = vmatpush3.bf16.msra.mxu1 %v2033_v16 }
 0xb70   : > { %v1525_v42 = vpop.f32.mrb[10].mxu1 }
 0xb71   : > { %v1529_v44 = vadd.f32 %v1525_v42, %v1289_v35  ;;  %v1980_v45 = vpop.f32.mrb[11].mxu1 }
 0xb73   : > { %v1537_v46 = vadd.f32 %v1856_v43, %v1529_v44 }
 0xb75   : > { %v1538_v47 = vadd.f32 %v1537_v46, %v2414_v0  ;;  %v1570_v0 = vld [vmem:[%s2657_s9 + $0x10] sm:$0xff] }
 0xb76   : > { %v2021_v57 = vpack.c.bf16 %v1571_v56, %v1570_v0 }
 0xb77   : > { %v1541_v48 = vsel %vm459_vm0, %v1538_v47, 0.0 }
 0xb78   : > { %1542 = vadd.xlane.f32.xlu1 %v1541_v48  ;;  %2022 = vmatpush3.bf16.msra.mxu0 %v2021_v57 }
 0xc05   : > { %v1543_v49 = vpop.xlane.xlu1 %1542 }
 0xc06   : > { %v1544_v50 = vmul.f32 0.03125, %v1543_v49 }
 0xc08   : > { %v1545_v51 = vsub.f32 %v1538_v47, %v1544_v50 }
 0xc0a   : > { %v1546_v52 = vmul.f32 %v1545_v51, %v1545_v51 }
 0xc0c   : > { %v1547_v53 = vsel %vm459_vm0, %v1546_v52, 0.0 }
 0xc0d   : > { %1548 = vadd.xlane.f32.xlu1 %v1547_v53 }
 0xc9a   : > { %v1549_v4 = vpop.xlane.xlu1 %1548 }
 0xc9b   : > { %v1550_v5 = vmul.f32 0.03125, %v1549_v4 }
 0xc9d   : > { %v1551_v6 = vadd.f32 1e-05, %v1550_v5 }
 0xc9f   : > { %2113 = vrsqrt.f32 %v1551_v6 }
 0xca9   : > { %v2114_v7 = vpop.eup %2113 }
 0xcaa   : > { %v1553_v9 = vmul.f32 %v2114_v7, %v1545_v51 }
 0xcac   : > { %v1560_v12 = vmul.f32 %v1857_v8, %v1553_v9 }
 0xcae   : > { %v1567_v14 = vadd.f32 %v1858_v11, %v1560_v12 }
 0xcb0   : > { %1990 = vmatmul.mubr.msk.f32.vlgmr.msra.gmra.mrb[14].mxu0 %vm459_vm0, %v1567_v14 }
 0xd83   : > { %v1648_v18 = vpop.f32.mrb[14].mxu0 }
 0xd84   : > { %v1649_v19 = vadd.f32 %v1859_v17, %v1648_v18  ;;  %v1991_v20 = vpop.f32.mrb[15].mxu0 }
 0xd86   : > { %v1652_v21 = vmax.f32 %v1649_v19, 0.0 }
 0xd88   : > { %2009 = vmatmul.mubr.msk.f32.vlgmr.msra.gmra.mrb[12].mxu1 %vm1668_vm3, %v1652_v21 }
 0xe5b   : > { %v1738_v23 = vpop.f32.mrb[12].mxu1 }
 0xe5c   : > { %v1739_v24 = vadd.f32 %v1861_v22, %v1738_v23  ;;  %v2010_v25 = vpop.f32.mrb[13].mxu1 }
 0xe5e   : > { %v1742_v27 = vadd.f32 %v1739_v24, %v1538_v47 }
 0xe60   : > { %1743 = vst.msk [vmem:[%s455_s30] sm:$0xff] %vm459_vm0, %v1742_v27 }
 0xe61   : > { %2158 = shalt.err (!%p2155_p4)
}
 0xe62   : > { %s2159_s23 = scalar_lea.hbm %s2603_s19, 128  ;;  %s2163_s30 = scalar_lea.hbm %s2661_s13, 256 }
 0xe63   : > { %p2160_p5 = scmp.ne.s32.totalorder %s2603_s19, %s2159_s23  ;;  %p2164_p0 = scmp.lt.u32.totalorder %s2603_s19, %s2661_s13 }
 0xe64   : > { %p2165_p1 = scmp.lt.u32.totalorder %s2163_s30, %s2159_s23  ;;  %p2167_p6 = scmp.lt.u32.totalorder %s2159_s23, %s2603_s19 }
 0xe65   : > { %p2161_p8 = pnand %p2160_p5, %p2678_p11 }
 0xe66   : > { %p2166_p3 = por %p2165_p1, %p2164_p0 }
 0xe67   : > { %p2162_p9 = pneg %p2161_p8 }
 0xe68   : > { %p2168_p12 = por %p2167_p6, %p2166_p3 }
 0xe6a   : > { %p2169_p13 = pnand %p2168_p12, %p2162_p9 }
 0xe6c   : > { %2172 = shalt.err (!%p2169_p13)
}
 0xe6d   : > { %2037 = dma.vmem_to_hbm [thread:$0]  (%p2678_p11), %s2605_s25, 128, %s2603_s19, %s1745_s15  }
 0xe6e PF: > { %s2679_s29 = sld [smem:[#allocation8_spill]]  ;;  %p2680_p7 = scmp.ne.s32.totalorder %s2674_s21, 0 }
 0xe6f   : > { %p2681_p10 = scmp.ge.s32.totalorder %s2211_s28, 2 }
 0xe71   : > { %p2044_p2 = pnand %p2681_p10, %p2680_p7 }
 0xe74   : > { %s1770_s16 = sand.u32 1, %s2679_s29  }
 0xe75   : > { %s1771_s22 = scalar_lea.sflag [#allocation4], %s1770_s16 }
 0xe76   : > { %2194 = dma.done.wait (!%p2044_p2), %s1771_s22, 128  }
 0xe77   : > { %2196 = vsyncadd (!%p2044_p2), %s1771_s22, 4294967168  ;;  %s2682_s28 = sld [smem:[#allocation10_spill]]  ;;  %s2683_s18 = sld [smem:[#allocation9_spill]] }
 0xe78   : > { %s2684_s27 = sld [smem:[#allocation11_spill]]  ;;  %s2685_s25 = smov %s2203_s26 }
 0xe7d   : > { %p26_p4 = scmp.ge.s32.totalorder %s2682_s28, 4   ;;  %s2686_s26 = smov %s2683_s18 }
 0xe7f   :  { %28 = sbr.rel (!%p26_p4) target bundleno = 5 (0x5), region = 117 }
 0xe86   :  { %1776 = vsyncpa [#allocation3], 1 }
 0xe87   :  { %1778 = vsyncpa [#allocation3 + $0x1], 1 }
 0xe88   :  { %1779 = vsyncpa [#allocation4], 1 }
 0xe89   :  { %1781 = vsyncpa [#allocation4 + $0x1], 1 }

</bundles_post_ra>
